<compile_context>
chip_gen: v7x
topology: tpu7x:2x2x1
jax: 0.10.0
libtpu: 0.0.40
codegen_flags: <defaults>
</compile_context>

<pallas_src>
import functools
import math

import jax
import jax.numpy as jnp
from jax import lax
from jax.experimental import pallas as pl
from jax.experimental.pallas import tpu as pltpu


_NEG_BIG = -1e30  # finite "-inf": avoids -inf - (-inf) = NaN in online softmax


def _round_up(x: int, m: int) -> int:
    return ((x + m - 1) // m) * m


def _vmem_limit_bytes(estimate: int) -> int:
    # Explicit scoped-VMEM budget: at least the 32 MiB default-ish floor, at
    # most 64 MiB (v7x physical per-TC), 2x the estimated working set.
    return int(min(64 * 2**20, max(32 * 2**20, 2 * estimate)))


# --------------------------- QKV projection kernel ---------------------------

def _qkv_proj_kernel(x_ref, w_ref, b_ref, o_ref):
    """x: (tp, d_in) bf16; w: (d_in, 3*Dp) bf16; b: (1, 3*Dp) f32; o: (tp, 3*Dp) bf16."""
    acc = jnp.dot(x_ref[...], w_ref[...], preferred_element_type=jnp.float32)
    o_ref[...] = (acc + b_ref[...]).astype(o_ref.dtype)


# --------------------------- flash attention kernel ---------------------------

def _flash_attn_kernel(q_ref, k_ref, v_ref, bias_ref, o_ref,
                       m_sc, l_sc, acc_sc, *, needs_mask):
    """One (q_tile, kv_tile) step of flash attention.

    q_ref: (tq, Dp) bf16 (scale pre-folded)   k_ref/v_ref: (tk, Dp) bf16
    bias_ref: (1, tk) f32 additive key-padding bias (0 or -1e30)
    o_ref: (tq, Dp)   m_sc/l_sc: (tq, 1) f32   acc_sc: (tq, Dp) f32
    """
    j = pl.program_id(1)

    @pl.when(j == 0)
    def _():
        m_sc[...] = jnp.full(m_sc.shape, _NEG_BIG, dtype=m_sc.dtype)
        l_sc[...] = jnp.zeros_like(l_sc)
        acc_sc[...] = jnp.zeros_like(acc_sc)

    # scores (tq, tk): contract last dims of q and k -> no K transpose; bf16
    # MXU operands with f32 accumulation.
    s = lax.dot_general(q_ref[...], k_ref[...], (((1,), (1,)), ((), ())),
                        preferred_element_type=jnp.float32)
    if needs_mask:  # static flag: only emitted when the sequence was padded
        s = s + bias_ref[...]

    # ---- online softmax update (f32) ----
    m_prev = m_sc[...]
    m_new = jnp.maximum(m_prev, jnp.max(s, axis=-1, keepdims=True))
    alpha = jnp.exp(m_prev - m_new)
    p = jnp.exp(s - m_new)
    l_sc[...] = alpha * l_sc[...] + jnp.sum(p, axis=-1, keepdims=True)
    acc_sc[...] = alpha * acc_sc[...] + jnp.dot(
        p.astype(v_ref.dtype), v_ref[...], preferred_element_type=jnp.float32)
    m_sc[...] = m_new

    # ---- finalize: normalize once per q-tile ----
    @pl.when(j == pl.num_programs(1) - 1)
    def _():
        inv_l = pl.reciprocal(l_sc[...], approx=True)
        o_ref[...] = (acc_sc[...] * inv_l).astype(o_ref.dtype)


# --------------------------------- wrapper -----------------------------------

def self_attention(x, w_query, w_key, w_value, b_query, b_key, b_value,
                   *, block_q=512, block_k=256):
    """x: (S, d_in); w_*: (d_out, d_in) PyTorch layout; b_*: (d_out,)."""
    S, d_in = x.shape
    d_out = w_query.shape[0]
    scale = 1.0 / math.sqrt(d_out)          # matches `key.shape[-1] ** 0.5`
    d_out_p = _round_up(d_out, 128)         # lane-dense MXU N / contraction dim

    # ---- tile selection: tk multiple of 128 (or == s_pad), tq multiple of tk.
    s8 = _round_up(S, 8)
    if s8 <= 128:
        tq = tk = s_pad = s8
    else:
        tk = min(_round_up(block_k, 128), _round_up(s8, 128))
        tq = min(_round_up(block_q, tk), _round_up(s8, tk))
        s_pad = _round_up(S, tq)
    needs_mask = s_pad != S

    # ---- glue (layout plumbing only): pad seq / d_out, fold scale into Q,
    #      pack [W_q|W_k|W_v] into one bf16 slab, build the key-padding bias.
    x_p = jnp.pad(x, ((0, s_pad - S), (0, 0))) if needs_mask else x
    x_p = x_p.astype(jnp.bfloat16)

    def pack_w(w, s=1.0):   # (d_out, d_in) -> (d_in, d_out_p)
        return jnp.pad(w.T * s, ((0, 0), (0, d_out_p - d_out)))

    def pack_b(b, s=1.0):   # (d_out,) -> (1, d_out_p)
        return jnp.pad(b * s, (0, d_out_p - d_out)).reshape(1, d_out_p)

    w_qkv = jnp.concatenate(
        [pack_w(w_query, scale), pack_w(w_key), pack_w(w_value)], axis=1
    ).astype(jnp.bfloat16)
    b_qkv = jnp.concatenate(
        [pack_b(b_query, scale), pack_b(b_key), pack_b(b_value)], axis=1
    ).astype(jnp.float32)

    # 0 for valid keys, -1e30 for padded key rows (padded x rows still pick up
    # the key bias b_k, so they must be masked).
    key_bias = jnp.where(jnp.arange(s_pad) < S, 0.0, _NEG_BIG
                         ).astype(jnp.float32).reshape(1, s_pad)

    # ----------------- call 1: fused Q/K/V projection (runs once) ------------
    tp = tq
    n_p = s_pad // tp
    proj_est = (2 * tp * d_in * 2                 # x tile (bf16, double-buffered)
                + 2 * d_in * 3 * d_out_p * 2      # weight slab
                + 2 * 3 * d_out_p * 4             # bias
                + 2 * tp * 3 * d_out_p * 2)       # output tile
    proj_flops = 2 * s_pad * d_in * 3 * d_out_p
    proj_bytes = (s_pad * d_in * 2 + d_in * 3 * d_out_p * 2
                  + 3 * d_out_p * 4 + s_pad * 3 * d_out_p * 2)

    qkv = pl.pallas_call(
        _qkv_proj_kernel,
        out_shape=jax.ShapeDtypeStruct((s_pad, 3 * d_out_p), jnp.bfloat16),
        grid_spec=pltpu.PrefetchScalarGridSpec(
            num_scalar_prefetch=0,
            grid=(n_p,),
            in_specs=[
                pl.BlockSpec((tp, d_in), lambda i: (i, 0)),            # x tile
                pl.BlockSpec((d_in, 3 * d_out_p), lambda i: (0, 0)),   # [Wq|Wk|Wv]
                pl.BlockSpec((1, 3 * d_out_p), lambda i: (0, 0)),      # [bq|bk|bv]
            ],
            out_specs=pl.BlockSpec((tp, 3 * d_out_p), lambda i: (i, 0)),
        ),
        compiler_params=pltpu.CompilerParams(
            dimension_semantics=("parallel",),
            vmem_limit_bytes=_vmem_limit_bytes(proj_est)),
        cost_estimate=pl.CostEstimate(
            flops=int(proj_flops), transcendentals=0,
            bytes_accessed=int(proj_bytes)),
    )(x_p, w_qkv, b_qkv)

    # ----------------- call 2: flash attention over Q/K/V tiles --------------
    nq, nk = s_pad // tq, s_pad // tk
    attn_est = (2 * tq * d_out_p * 2              # q tile
                + 4 * tk * d_out_p * 2            # k + v tiles (double-buffered)
                + 2 * tk * 4                      # bias row
                + 2 * tq * d_out_p * 4            # output tile
                + tq * d_out_p * 4 + 2 * tq * 4   # acc / m / l scratch
                + 2 * tq * tk * 4)                # live score / p tiles
    attn_flops = 4 * s_pad * s_pad * d_out_p
    attn_trans = s_pad * s_pad
    attn_bytes = (nq * s_pad * 2 * d_out_p * 2    # K,V re-read per q tile
                  + s_pad * d_out_p * 2           # Q
                  + s_pad * d_out_p * 4           # output
                  + nq * s_pad * 4)               # bias

    kernel = functools.partial(_flash_attn_kernel, needs_mask=needs_mask)

    out_p = pl.pallas_call(
        kernel,
        out_shape=jax.ShapeDtypeStruct((s_pad, d_out_p), x.dtype),
        grid_spec=pltpu.PrefetchScalarGridSpec(
            num_scalar_prefetch=0,
            grid=(nq, nk),
            in_specs=[
                pl.BlockSpec((tq, d_out_p), lambda i, j: (i, 0)),   # Q slab cols
                pl.BlockSpec((tk, d_out_p), lambda i, j: (j, 1)),   # K slab cols
                pl.BlockSpec((tk, d_out_p), lambda i, j: (j, 2)),   # V slab cols
                pl.BlockSpec((1, tk), lambda i, j: (0, j)),         # key-pad bias
            ],
            out_specs=pl.BlockSpec((tq, d_out_p), lambda i, j: (i, 0)),
            scratch_shapes=[
                pltpu.VMEM((tq, 1), jnp.float32),          # running max m
                pltpu.VMEM((tq, 1), jnp.float32),          # running denom l
                pltpu.VMEM((tq, d_out_p), jnp.float32),    # output accumulator
            ],
        ),
        compiler_params=pltpu.CompilerParams(
            dimension_semantics=("parallel", "arbitrary"),
            vmem_limit_bytes=_vmem_limit_bytes(attn_est)),
        cost_estimate=pl.CostEstimate(
            flops=int(attn_flops), transcendentals=int(attn_trans),
            bytes_accessed=int(attn_bytes)),
    )(qkv, qkv, qkv, key_bias)

    return out_p[:S, :d_out]


# ------------------------------ reference & test ------------------------------

def _reference(x, w_query, w_key, w_value, b_query, b_key, b_value):
    q = x @ w_query.T + b_query
    k = x @ w_key.T + b_key
    v = x @ w_value.T + b_value
    s = q @ k.T / math.sqrt(k.shape[-1])
    w = jax.nn.softmax(s, axis=-1)
    return w @ v


def _make_params(key, d_in, d_out):
    k_wq, k_wk, k_wv, k_bq, k_bk, k_bv = jax.random.split(key, 6)
    bound = 1.0 / math.sqrt(d_in)   # nn.Linear default init range
    u = lambda k, shape: jax.random.uniform(k, shape, jnp.float32, -bound, bound)
    return (u(k_wq, (d_out, d_in)), u(k_wk, (d_out, d_in)), u(k_wv, (d_out, d_in)),
            u(k_bq, (d_out,)), u(k_bk, (d_out,)), u(k_bv, (d_out,)))


if __name__ == "__main__":
    root = jax.random.PRNGKey(0)

    # Case 1: tiny, single tile, no padding.
    # Case 2: single tile with seq padding -> key-padding bias path.
    # Case 3: multi-tile grid (3x3) with padding + mask, different d_in/d_out.
    cases = [
        dict(seq_len=8,   d_in=32, d_out=16, block_q=512, block_k=256),
        dict(seq_len=45,  d_in=32, d_out=16, block_q=512, block_k=256),
        dict(seq_len=300, d_in=64, d_out=48, block_q=128, block_k=128),
    ]

    for idx, cfg in enumerate(cases):
        key = jax.random.fold_in(root, idx)
        k_x, k_p = jax.random.split(key)
        x = jax.random.normal(k_x, (cfg["seq_len"], cfg["d_in"]), dtype=jnp.float32)
        params = _make_params(k_p, cfg["d_in"], cfg["d_out"])

        out = self_attention(x, *params,
                             block_q=cfg["block_q"], block_k=cfg["block_k"])
        out = jax.block_until_ready(out)

        ref = _reference(x, *params)
        assert out.shape == (cfg["seq_len"], cfg["d_out"])
        # bf16 MXU operands (f32 accumulate) + approx reciprocal => relaxed tol.
        assert jnp.allclose(out, ref, atol=2e-2, rtol=2e-2), (
            f"mismatch vs reference in case {idx}: "
            f"max abs err {jnp.max(jnp.abs(out - ref))}")

    print("KERNEL_OK")
</pallas_src>

<mosaic_0001>
module attributes {stable_mosaic.version = 11 : i64} {
  func.func @_qkv_proj_kernel(%arg0: i32, %arg1: memref<8x32xbf16, #tpu.memory_space<vmem>>, %arg2: memref<32x384xbf16, #tpu.memory_space<vmem>>, %arg3: memref<1x384xf32, #tpu.memory_space<vmem>>, %arg4: memref<8x384xbf16, #tpu.memory_space<vmem>>) attributes {dimension_semantics = [#tpu.dimension_semantics<parallel>], iteration_bounds = array<i64: 1>, scalar_prefetch = 0 : i64, scratch_operands = 0 : i64, tpu.core_type = #tpu.core_type<tc>, window_params = [{transform_indices = @transform_0, window_bounds = array<i64: 8, 32>}, {pipeline_mode = #tpu.pipeline_mode<synchronous>, transform_indices = @transform_1, window_bounds = array<i64: 32, 384>}, {pipeline_mode = #tpu.pipeline_mode<synchronous>, transform_indices = @transform_2, window_bounds = array<i64: 1, 384>}, {transform_indices = @transform_3, window_bounds = array<i64: 8, 384>}]} {
    %c0 = arith.constant 0 : index
    %c0_0 = arith.constant 0 : index
    %0 = vector.load %arg1[%c0, %c0_0] : memref<8x32xbf16, #tpu.memory_space<vmem>>, vector<8x32xbf16>
    %c0_1 = arith.constant 0 : index
    %c0_2 = arith.constant 0 : index
    %1 = vector.load %arg2[%c0_1, %c0_2] : memref<32x384xbf16, #tpu.memory_space<vmem>>, vector<32x384xbf16>
    %cst = arith.constant dense<0.000000e+00> : vector<8x384xf32>
    %2 = tpu.matmul %0, %1, %cst {dimension_numbers = #tpu.dot_dimension_numbers<[1], [0], [0], [1], [0, 0, 1, 1], [], []>} : vector<8x32xbf16>, vector<32x384xbf16>, vector<8x384xf32> -> vector<8x384xf32>
    %c0_3 = arith.constant 0 : index
    %c0_4 = arith.constant 0 : index
    %3 = vector.load %arg3[%c0_3, %c0_4] : memref<1x384xf32, #tpu.memory_space<vmem>>, vector<1x384xf32>
    %4 = vector.broadcast %3 : vector<1x384xf32> to vector<8x384xf32>
    %5 = arith.addf %2, %4 : vector<8x384xf32>
    %6 = arith.truncf %5 : vector<8x384xf32> to vector<8x384xbf16>
    %c0_5 = arith.constant 0 : index
    %c0_6 = arith.constant 0 : index
    %7 = vector.load %arg4[%c0_5, %c0_6] : memref<8x384xbf16, #tpu.memory_space<vmem>>, vector<8x384xbf16>
    tpu.vector_store %arg4[%c0_5, %c0_6], %6 {strides = array<i32>} : memref<8x384xbf16, #tpu.memory_space<vmem>>, vector<8x384xbf16>,
    return
  }
  func.func @transform_0(%arg0: i32) -> (i32, i32) {
    %c0_i32 = arith.constant 0 : i32
    %c0_i32_0 = arith.constant 0 : i32
    return %arg0, %c0_i32 : i32, i32
  }
  func.func @transform_1(%arg0: i32) -> (i32, i32) {
    %c0_i32 = arith.constant 0 : i32
    %c0_i32_0 = arith.constant 0 : i32
    %c0_i32_1 = arith.constant 0 : i32
    return %c0_i32, %c0_i32_0 : i32, i32
  }
  func.func @transform_2(%arg0: i32) -> (i32, i32) {
    %c0_i32 = arith.constant 0 : i32
    %c0_i32_0 = arith.constant 0 : i32
    %c0_i32_1 = arith.constant 0 : i32
    return %c0_i32, %c0_i32_0 : i32, i32
  }
  func.func @transform_3(%arg0: i32) -> (i32, i32) {
    %c0_i32 = arith.constant 0 : i32
    %c0_i32_0 = arith.constant 0 : i32
    return %arg0, %c0_i32 : i32, i32
  }
}

</mosaic_0001>

<bundles_post_ra>
// kernel: tpu_custom_call.1
= control target key start
LH: loop header
LB: loop body
LE: loop exit
PB: predicated region body
PF: predicated region fallthrough
CT: control target
= control target key end

     0   :  { %8 = vsyncpa [#allocation3], 0  ;;  %s401_s0 = inlined_call_operand.hbm [shape: bf16[8,32], index: 0, kind: input, shape index: {}]   ;;  %s402_s1 = inlined_call_operand.hbm [shape: bf16[32,384], index: 1, kind: input, shape index: {}]   ;;  %s403_s2 = inlined_call_operand.vmem [shape: f32[1,384], index: 2, kind: input, shape index: {}]   ;;  %s404_s3 = inlined_call_operand.hbm [shape: bf16[8,384], index: 3, kind: output, shape index: {}]  }
   0x1   :  { %9 = vsyncpa [#allocation6], 0 }
   0x2   :  { %10 = vsyncpa [#allocation4], 0  ;;  %s327_s12 = smov [#allocation2]   ;;  %s328_s14 = smov [#allocation5]  }
   0x3   :  { %s17_s13 = sshll.u32 %s327_s12, 4  ;;  %s26_s15 = sshll.u32 %s328_s14, 4  ;;  %s18_s13 = int_to_ptr.vmem [resolvable:$true] %s17_s13  ;;  %s355_s15 = int_to_ptr.vmem [resolvable:$true] %s26_s15 }
   0x4   :  { %s255_s18 = scalar_lea.hbm %s401_s0, 64 }
   0x5   :  { %p256_p0 = scmp.ne.s32.totalorder %s401_s0, %s255_s18  ;;  %p259_p1 = scmp.lt.u32.totalorder %s255_s18, %s401_s0 }
   0x7   :  { %p261_p2 = pnand %p259_p1, %p256_p0 }
   0x9   :  { %264 = shalt.err (!%p261_p2)
}
   0xa   :  { %s265_s23 = scalar_lea.vmem %s18_s13, 64  ;;  %p270_p4 = scmp.lt.s32.totalorder %s18_s13, %s18_s13 }
   0xb   :  { %p266_p3 = scmp.ne.s32.totalorder %s18_s13, %s265_s23  ;;  %p271_p5 = scmp.lt.s32.totalorder %s265_s23, %s265_s23 }
   0xd   :  { %p272_p6 = por %p271_p5, %p270_p4 }
   0xf   :  { %p273_p7 = pnand %p272_p6, %p266_p3 }
  0x11   :  { %276 = shalt.err (!%p273_p7)
}
  0x12   :  { %20 = dma.hbm_to_vmem [thread:$0]  %s401_s0, 64, %s18_s13, [#allocation3]  }
  0x13   :  { %s277_s28 = scalar_lea.hbm %s402_s1, 768 }
  0x14   :  { %p278_p8 = scmp.ne.s32.totalorder %s402_s1, %s277_s28  ;;  %p281_p9 = scmp.lt.u32.totalorder %s277_s28, %s402_s1 }
  0x16   :  { %p283_p10 = pnand %p281_p9, %p278_p8 }
  0x18   :  { %286 = shalt.err (!%p283_p10)
}
  0x19   :  { %s287_s6 = scalar_lea.vmem %s355_s15, 768  ;;  %p292_p12 = scmp.lt.s32.totalorder %s355_s15, %s355_s15 }
  0x1a   :  { %p288_p11 = scmp.ne.s32.totalorder %s355_s15, %s287_s6  ;;  %p293_p13 = scmp.lt.s32.totalorder %s287_s6, %s287_s6 }
  0x1c   :  { %p294_p0 = por %p293_p13, %p292_p12 }
  0x1e   :  { %p295_p1 = pnand %p294_p0, %p288_p11 }
  0x20   :  { %298 = shalt.err (!%p295_p1)
}
  0x21   :  { %s329_s0 = smov 192   ;;  %s330_s7 = smov 12  }
  0x22   :  { %32 = dma.hbm_to_vmem [thread:$0]  %s402_s1, 768, %s355_s15, [#allocation6], %s329_s0, %s329_s0, %s330_s7  }
  0x23   :  { %321 = dma.done.wait [#allocation3], 64  }
  0x24   :  { %322 = vsyncadd [#allocation3], 4294967232 }
  0x25   :  { %323 = dma.done.wait [#allocation6], 768  }
  0x26   :  { %324 = vsyncadd [#allocation6], 4294966528  ;;  %v331_v0 = vmov 0.0   ;;  %vm332_vm0 = vmmov 0   ;;  %v333_v1 = vmov 0   ;;  %vm100_vm1 = vcmask 261120  }
  0x27   :  { %231 = vmatprep.subr.bf16.mxu1 %v331_v0  ;;  %235 = vmatprep.mubr.msk.bf16.mxu1 %vm332_vm0, %v331_v0  ;;  %v247_v2 = vld [vmem:[#allocation5 + $0x4] ss:$12 sps:$4 sm:$0xff]   ;;  %v249_v3 = vld [vmem:[#allocation5 + $0x8] ss:$12 sps:$4 sm:$0xff]   ;;  %v250_v4 = vld [vmem:[#allocation5] ss:$12 sps:$4 sm:$0xff]   ;;  %v53_v9 = vlaneseq }
  0x28   :  { %136 = vmatprep.mubr.bf16.mxu0 %v333_v1  ;;  %104 = vmatprep.subr.bf16.mxu0 %v247_v2  ;;  %v251_v5 = vld [vmem:[#allocation5 + $0x1c] ss:$12 sps:$4 sm:$0xff]   ;;  %v253_v6 = vld [vmem:[#allocation5 + $0x20] ss:$12 sps:$4 sm:$0xff]   ;;  %v254_v7 = vld [vmem:[#allocation5 + $0x18] ss:$12 sps:$4 sm:$0xff]  }
  0x29   :  { %232 = vmatpush3.bf16.msra.mxu1 %v249_v3  ;;  %105 = vmatpush1.bf16.msra.mxu0 %v250_v4  ;;  %v42_v8 = vld [vmem:[#allocation2] sm:$0xf]  ;;  %v54_v10 = vshrl.u32 %v53_v9, 7  ;;  %s334_s11 = smov [#allocation7]  }
  0x2a   :  { %233 = vmatprep.subr.bf16.mxu1 %v331_v0  ;;  %106 = vmatprep.subr.bf16.mxu0 %v251_v5  ;;  %v51_v12 = vld [vmem:[%s403_s2] sm:$0x7]  ;;  %s206_s12 = sshll.u32 %s334_s11, 4  ;;  %s207_s12 = int_to_ptr.vmem [resolvable:$true] %s206_s12 }
  0x2b   :  { %v63_v11 = vsub.s32 2, %v54_v10  ;;  %v55_v13 = vsub.s32 0, %v54_v10  ;;  %v59_v14 = vsub.s32 1, %v54_v10  ;;  %s299_s2 = scalar_lea.vmem %s207_s12, 192  ;;  %p304_p3 = scmp.lt.s32.totalorder %s207_s12, %s207_s12 }
  0x2c   :  { %p300_p2 = scmp.ne.s32.totalorder %s207_s12, %s299_s2  ;;  %p305_p4 = scmp.lt.s32.totalorder %s299_s2, %s299_s2 }
  0x2d   :  { %234 = vmatpush3.bf16.msra.mxu1 %v253_v6  ;;  %107 = vmatpush1.bf16.msra.mxu0 %v254_v7  ;;  %v64_v15 = vrot.slane %v51_v12, %v63_v11  ;;  %v56_v16 = vrot.slane %v51_v12, %v55_v13  ;;  %v60_v17 = vrot.slane %v51_v12, %v59_v14 }
  0x2e   :  { %p306_p5 = por %p305_p4, %p304_p3 }
  0x30   :  { %236 = vmatmul.mubr.msk.bf16.vlgmr.msra.gmra.mrb[0].mxu1 %vm100_vm1, %v42_v8  ;;  %222 = vmatmul.mubr.msk.bf16.vlgmr.msra.gmra.mrb[0].mxu0 %vm100_vm1, %v42_v8  ;;  %p307_p6 = pnand %p306_p5, %p300_p2 }
 0x103   :  { %v179_v18 = vpop.f32.mrb[0].mxu1  ;;  %v138_v20 = vpop.f32.mrb[0].mxu0 }
 0x104   :  { %v180_v19 = vadd.f32 %v179_v18, %v64_v15  ;;  %v237_v21 = vpop.f32.mrb[1].mxu1  ;;  %v139_v22 = vadd.f32 %v138_v20, %v56_v16  ;;  %v140_v23 = vpop.f32.mrb[1].mxu0 }
 0x105   :  { %v182_v24 = vpop.f32.mrb[2].mxu1  ;;  %v141_v26 = vadd.f32 %v140_v23, %v60_v17  ;;  %v142_v27 = vpop.f32.mrb[2].mxu0 }
 0x106   :  { %v227_v25 = vpack.c.bf16 %v180_v19, %v180_v19  ;;  %v238_v28 = vpop.f32.mrb[3].mxu1  ;;  %v143_v29 = vpop.f32.mrb[3].mxu0 }
 0x107   :  { %v226_v30 = vpack.c.bf16 %v141_v26, %v139_v22 }
 0x108   :  { %199 = vst [vmem:[#allocation7 + $0x8] sm:$0xf] %v227_v25 }
 0x109   :  { %198 = vst [vmem:[#allocation7] sm:$0xff] %v226_v30 }
 0x10a   :  { %310 = shalt.err (!%p307_p6)
}
 0x10b   :  { %s311_s15 = scalar_lea.hbm %s404_s3, 192 }
 0x10c   :  { %p312_p7 = scmp.ne.s32.totalorder %s404_s3, %s311_s15  ;;  %p315_p8 = scmp.lt.u32.totalorder %s311_s15, %s404_s3 }
 0x10e   :  { %p317_p9 = pnand %p315_p8, %p312_p7 }
 0x110   :  { %320 = shalt.err (!%p317_p9)
}
 0x111   :  { %209 = dma.vmem_to_hbm [thread:$0]  %s207_s12, 192, %s404_s3, [#allocation4]  }
 0x112   :  { %325 = dma.done.wait [#allocation4], 192  }
 0x113   :  { %326 = vsyncadd [#allocation4], 4294967104 }
 0x114   :  { %213 = vsyncpa [#allocation3], 1 }
 0x115   :  { %214 = vsyncpa [#allocation6], 1 }
 0x116   :  { %215 = vsyncpa [#allocation4], 1 }

</bundles_post_ra>
